<compile_context>
chip_gen: v7x
topology: tpu7x:2x2x1
jax: 0.10.0
libtpu: 0.0.40
codegen_flags: <defaults>
</compile_context>

<pallas_src>
import functools

import jax
import jax.numpy as jnp
from jax.experimental import pallas as pl
from jax.experimental.pallas import tpu as pltpu


def _rmsnorm_kernel(x_ref, w_ref, o_ref, *, eps, inv_h, round_dtype):
    # x_ref: (TM, Hp) tile, w_ref: (1, Hp) weight, o_ref: (TM, Hp) output.
    x = x_ref[...].astype(jnp.float32)
    # sum * (1/H_real): correct even when the lane dim was zero-padded to 128n.
    variance = jnp.sum(x * x, axis=-1, keepdims=True) * inv_h
    inv = jax.lax.rsqrt(variance + eps)  # EUP slot; effectively free here
    if round_dtype is None:
        # Fast path (also the f32-input path): stay in f32, single final cast.
        # Keeps the VPU off the critical path on v7x (3.2 TB/s HBM).
        o_ref[...] = (w_ref[...].astype(jnp.float32) * x * inv).astype(o_ref.dtype)
    else:
        # PyTorch-faithful rounding: cast to the input dtype BEFORE the weight
        # multiply, exactly like `self.weight * hidden_states.to(input_dtype)`.
        normed = (x * inv).astype(round_dtype)
        o_ref[...] = (w_ref[...] * normed).astype(o_ref.dtype)


def _round_up(x, m):
    return ((x + m - 1) // m) * m


def _sublane_packing(dtype):
    """Rows per packed sublane group: 8 for f32, 16 for bf16/f16, 32 for 8-bit."""
    return max(8, 32 // jnp.dtype(dtype).itemsize)


def _vmem_capacity_bytes():
    """Best-effort query of physical VMEM; conservative (v7x, per-TC) fallback."""
    try:
        info = pltpu.get_tpu_info()
        for attr in ("vmem_capacity_bytes", "vmem_size_bytes", "vmem_bytes"):
            v = getattr(info, attr, None)
            if v:
                return int(v)
    except Exception:
        pass
    return 64 << 20


def _pick_tile_and_vmem_limit(rows, h_pad, in_dtype, out_dtype, max_block_rows):
    """Choose the row-tile size and scoped-VMEM limit for this device.

    Per-step VMEM estimate (double-buffered in + out, plus ~3 materialized f32
    working tiles: x, x*x / normed, and the product):
        TM * Hp * (2*in_bytes + 2*out_bytes + 12)
    """
    vmem_cap = _vmem_capacity_bytes()
    # v7x (64 MiB/TC) -> 40 MiB scoped; v5e/v6e (128 MiB) -> 64 MiB.  Anything
    # beyond a ~512-row tile buys <1% of HBM roofline, so stay conservative.
    vmem_limit = (40 << 20) if vmem_cap <= (64 << 20) else (64 << 20)

    in_b = jnp.dtype(in_dtype).itemsize
    out_b = jnp.dtype(out_dtype).itemsize
    bytes_per_row = h_pad * (2 * in_b + 2 * out_b + 3 * 4)

    pack = _sublane_packing(in_dtype)
    tm = vmem_limit // max(bytes_per_row, 1)
    tm = min(tm, max_block_rows)
    # Target >= ~16 grid steps (≈8 per TensorCore on v7x megacore) so the
    # double-buffered pipeline has enough work to hide DMA prime/drain.
    tm = min(tm, _round_up(pl.cdiv(rows, 16), pack))
    tm = max(pack, (tm // pack) * pack)
    return tm, int(vmem_limit)


def rmsnorm(hidden_states, weight, eps=1e-6, *, promote_output_dtype=True,
            exact_pytorch_rounding=True, max_block_rows=512):
    """Pallas RMSNorm forward.

    hidden_states: (..., H) array of any float dtype.
    weight:        (H,) array (PyTorch init: ones, float32).

    promote_output_dtype:
        True  -> output dtype = promote(weight.dtype, input.dtype)  (PyTorch-faithful).
        False -> output stays in the input dtype.  STRONGLY RECOMMENDED for
                 bf16/fp16 inputs: halves HBM write traffic on this
                 bandwidth-bound kernel.  (Intentional divergence from PyTorch's
                 dtype promotion -- document at the call site.)
    exact_pytorch_rounding:
        True  -> cast x*rsqrt(var) to the input dtype before the weight multiply
                 (bit-faithful to PyTorch for sub-f32 inputs).
        False -> keep everything in f32 with one final cast (v7x fast path;
                 differs by at most one low-precision rounding).
    """
    orig_shape = hidden_states.shape
    H = orig_shape[-1]
    input_dtype = hidden_states.dtype

    x2d = hidden_states.reshape(-1, H)
    rows = x2d.shape[0]

    out_dtype = (jnp.promote_types(weight.dtype, input_dtype)
                 if promote_output_dtype else input_dtype)

    # Faithful intermediate rounding only matters for sub-f32 inputs.
    round_dtype = input_dtype if (exact_pytorch_rounding and
                                  input_dtype != jnp.float32) else None

    # Stage the weight so the in-kernel multiply needs no extra per-element casts.
    if round_dtype is None:
        w2d = weight.astype(jnp.float32).reshape(1, H)
    elif not promote_output_dtype:
        # Native low-precision multiply (e.g. bf16 * bf16 -> bf16).
        w2d = weight.astype(input_dtype).reshape(1, H)
    else:
        w2d = weight.reshape(1, H)  # f32 weight * bf16 normed -> f32 (PyTorch)

    # Lane guard: keep the store path unmasked (lane-dense) when H isn't a
    # multiple of 128 and padding costs < 2x bytes.  Variance uses 1/H (real H),
    # so the zero-padded columns never contaminate the result.
    h_pad = H
    if H > 128 and H % 128 != 0:
        h_pad = _round_up(H, 128)
        x2d = jnp.pad(x2d, ((0, 0), (0, h_pad - H)))
        w2d = jnp.pad(w2d, ((0, 0), (0, h_pad - H)))

    tm, vmem_limit = _pick_tile_and_vmem_limit(
        rows, h_pad, input_dtype, out_dtype, max_block_rows)

    # Ragged trailing ROW block is handled by Pallas (padded read, masked write);
    # garbage rows can never leak because variance is strictly per-row.
    grid = (pl.cdiv(rows, tm),)

    kernel = functools.partial(
        _rmsnorm_kernel, eps=eps, inv_h=1.0 / H, round_dtype=round_dtype)

    out = pl.pallas_call(
        kernel,
        out_shape=jax.ShapeDtypeStruct((rows, h_pad), out_dtype),
        grid_spec=pltpu.PrefetchScalarGridSpec(
            num_scalar_prefetch=0,
            grid=grid,
            in_specs=[
                # TODO(synk): if xprof shows exposed DMA at small tiles on v7x,
                # sweep pipeline_mode=pl.Buffered(3) on this spec.
                pl.BlockSpec((tm, h_pad), lambda i: (i, 0)),
                pl.BlockSpec((1, h_pad), lambda i: (0, 0)),
            ],
            out_specs=pl.BlockSpec((tm, h_pad), lambda i: (i, 0)),
        ),
        compiler_params=pltpu.CompilerParams(
            dimension_semantics=("parallel",),   # megacore sharding on v7x
            vmem_limit_bytes=vmem_limit,
        ),
    )(x2d, w2d)

    if h_pad != H:
        out = out[:, :H]
    return out.reshape(orig_shape[:-1] + (H,))


def rmsnorm_ref(hidden_states, weight, eps=1e-6):
    """Pure-JAX reference mirroring the PyTorch forward exactly."""
    input_dtype = hidden_states.dtype
    x = hidden_states.astype(jnp.float32)
    variance = jnp.mean(x * x, axis=-1, keepdims=True)
    x = x * jax.lax.rsqrt(variance + eps)
    return weight * x.astype(input_dtype)


if __name__ == "__main__":
    key = jax.random.PRNGKey(0)
    k0, k1, k2, k3, kw, kw2 = jax.random.split(key, 6)

    batch, seq, hidden = 2, 8, 32
    weight = jax.random.normal(kw, (hidden,), dtype=jnp.float32) * 0.1 + 1.0

    # --- 1. f32, rows divisible by tile ----------------------------------
    x = jax.random.normal(k0, (batch, seq, hidden), dtype=jnp.float32)
    out = jax.block_until_ready(rmsnorm(x, weight, eps=1e-6))
    ref = rmsnorm_ref(x, weight, eps=1e-6)
    assert out.shape == ref.shape and out.dtype == ref.dtype
    assert jnp.allclose(out, ref, atol=1e-5, rtol=1e-5), "mismatch (f32)"

    # --- 2. ragged rows (rows = 15, not a multiple of the 8-row tile) ----
    x_r = jax.random.normal(k1, (3, 5, hidden), dtype=jnp.float32)
    out_r = jax.block_until_ready(rmsnorm(x_r, weight, eps=1e-6))
    ref_r = rmsnorm_ref(x_r, weight, eps=1e-6)
    assert out_r.shape == ref_r.shape and out_r.dtype == ref_r.dtype
    assert jnp.allclose(out_r, ref_r, atol=1e-5, rtol=1e-5), "mismatch (ragged)"

    # --- 3. bf16 input, PyTorch-faithful promoted (f32) output -----------
    x_bf = jax.random.normal(k2, (batch, seq, hidden),
                             dtype=jnp.float32).astype(jnp.bfloat16)
    out_bf = jax.block_until_ready(rmsnorm(x_bf, weight, eps=1e-6))
    ref_bf = rmsnorm_ref(x_bf, weight, eps=1e-6)
    assert out_bf.shape == ref_bf.shape and out_bf.dtype == ref_bf.dtype
    assert jnp.allclose(out_bf, ref_bf, atol=2e-2, rtol=2e-2), "mismatch (bf16 faithful)"

    # --- 4. bf16 input, bf16 output (recommended low-traffic path) -------
    out_bf16 = jax.block_until_ready(
        rmsnorm(x_bf, weight, eps=1e-6, promote_output_dtype=False))
    assert out_bf16.dtype == jnp.bfloat16
    assert jnp.allclose(out_bf16.astype(jnp.float32),
                        ref_bf.astype(jnp.bfloat16).astype(jnp.float32),
                        atol=2e-2, rtol=2e-2), "mismatch (bf16 out)"

    # --- 5. bf16 input, fast f32-math path (v7x cast-chain trim) ---------
    out_fast = jax.block_until_ready(
        rmsnorm(x_bf, weight, eps=1e-6, promote_output_dtype=False,
                exact_pytorch_rounding=False))
    assert out_fast.dtype == jnp.bfloat16
    assert jnp.allclose(out_fast.astype(jnp.float32),
                        ref_bf.astype(jnp.float32),
                        atol=3e-2, rtol=3e-2), "mismatch (bf16 fast path)"

    # --- 6. H > 128 and not a multiple of 128 (lane-padding branch) ------
    h2 = 200
    w2 = jax.random.normal(kw2, (h2,), dtype=jnp.float32) * 0.1 + 1.0
    x2 = jax.random.normal(k3, (2, 3, h2), dtype=jnp.float32)
    out2 = jax.block_until_ready(rmsnorm(x2, w2, eps=1e-6))
    ref2 = rmsnorm_ref(x2, w2, eps=1e-6)
    assert out2.shape == ref2.shape and out2.dtype == ref2.dtype
    assert jnp.allclose(out2, ref2, atol=1e-5, rtol=1e-5), "mismatch (H=200 padded lanes)"

    print("KERNEL_OK")
</pallas_src>

<mosaic_0001>
module attributes {stable_mosaic.version = 11 : i64} {
  func.func @_rmsnorm_kernel(%arg0: i32, %arg1: memref<8x32xf32, #tpu.memory_space<vmem>>, %arg2: memref<1x32xf32, #tpu.memory_space<vmem>>, %arg3: memref<8x32xf32, #tpu.memory_space<vmem>>) attributes {dimension_semantics = [#tpu.dimension_semantics<parallel>], iteration_bounds = array<i64: 2>, scalar_prefetch = 0 : i64, scratch_operands = 0 : i64, tpu.core_type = #tpu.core_type<tc>, window_params = [{transform_indices = @transform_0, window_bounds = array<i64: 8, 32>}, {pipeline_mode = #tpu.pipeline_mode<synchronous>, transform_indices = @transform_1, window_bounds = array<i64: 1, 32>}, {transform_indices = @transform_2, window_bounds = array<i64: 8, 32>}]} {
    %c0 = arith.constant 0 : index
    %c0_0 = arith.constant 0 : index
    %0 = vector.load %arg1[%c0, %c0_0] : memref<8x32xf32, #tpu.memory_space<vmem>>, vector<8x32xf32>
    %1 = arith.mulf %0, %0 : vector<8x32xf32>
    %cst = arith.constant dense<0.000000e+00> : vector<8xf32>
    %2 = vector.multi_reduction <add>, %1, %cst [1] : vector<8x32xf32> to vector<8xf32>
    %3 = vector.shape_cast %2 : vector<8xf32> to vector<8x1xf32>
    %cst_1 = arith.constant 3.125000e-02 : f32
    %4 = vector.broadcast %cst_1 : f32 to vector<8x1xf32>
    %5 = arith.mulf %3, %4 : vector<8x1xf32>
    %cst_2 = arith.constant 9.99999997E-7 : f32
    %6 = vector.broadcast %cst_2 : f32 to vector<8x1xf32>
    %7 = arith.addf %5, %6 : vector<8x1xf32>
    %8 = math.rsqrt %7 : vector<8x1xf32>
    %c0_3 = arith.constant 0 : index
    %c0_4 = arith.constant 0 : index
    %9 = vector.load %arg2[%c0_3, %c0_4] : memref<1x32xf32, #tpu.memory_space<vmem>>, vector<1x32xf32>
    %10 = vector.broadcast %9 : vector<1x32xf32> to vector<8x32xf32>
    %11 = arith.mulf %10, %0 : vector<8x32xf32>
    %12 = vector.broadcast %8 : vector<8x1xf32> to vector<8x32xf32>
    %13 = arith.mulf %11, %12 : vector<8x32xf32>
    %c0_5 = arith.constant 0 : index
    %c0_6 = arith.constant 0 : index
    %14 = vector.load %arg3[%c0_5, %c0_6] : memref<8x32xf32, #tpu.memory_space<vmem>>, vector<8x32xf32>
    tpu.vector_store %arg3[%c0_5, %c0_6], %13 {strides = array<i32>} : memref<8x32xf32, #tpu.memory_space<vmem>>, vector<8x32xf32>,
    return
  }
  func.func @transform_0(%arg0: i32) -> (i32, i32) {
    %c0_i32 = arith.constant 0 : i32
    %c0_i32_0 = arith.constant 0 : i32
    return %arg0, %c0_i32 : i32, i32
  }
  func.func @transform_1(%arg0: i32) -> (i32, i32) {
    %c0_i32 = arith.constant 0 : i32
    %c0_i32_0 = arith.constant 0 : i32
    %c0_i32_1 = arith.constant 0 : i32
    return %c0_i32, %c0_i32_0 : i32, i32
  }
  func.func @transform_2(%arg0: i32) -> (i32, i32) {
    %c0_i32 = arith.constant 0 : i32
    %c0_i32_0 = arith.constant 0 : i32
    return %arg0, %c0_i32 : i32, i32
  }
}

</mosaic_0001>

<bundles_post_ra>
// kernel: tpu_custom_call.1
= control target key start
LH: loop header
LB: loop body
LE: loop exit
PB: predicated region body
PF: predicated region fallthrough
CT: control target
= control target key end

     0   :  { %7 = vsyncpa [#allocation3], 0  ;;  %s604_s0 = inlined_call_operand.hbm [shape: f32[16,32], index: 0, kind: input, shape index: {}]   ;;  %s605_s1 = inlined_call_operand.vmem [shape: f32[1,32], index: 1, kind: input, shape index: {}]   ;;  %s606_s2 = inlined_call_operand.hbm [shape: f32[16,32], index: 2, kind: output, shape index: {}]  }
   0x1   :  { %9 = vsyncpa [#allocation3 + $0x1], 0 }
   0x2   :  { %10 = vsyncpa [#allocation4], 0 }
   0x3   :  { %12 = vsyncpa [#allocation4 + $0x1], 0  ;;  %s438_s9 = smov 0   ;;  %s440_s10 = smov 0  }
   0x4   :  { %s442_s11 = smov 0   ;;  %s444_s12 = smov 0  }
   0x5 LB: > { %s459_s13 = sadd.s32 4294967295, %s419_s12   ;;  %s262_s14 = sadd.s32 4294967294, %s419_s12   ;;  %s419_s12 = sphi %s444_s12, %s621_s12   ;;  %s415_s11 = sphi %s442_s11, %s620_s11   ;;  %s411_s10 = sphi %s440_s10, %s619_s10   ;;  %s407_s9 = sphi %s438_s9, %s618_s9  }
   0x6   : > { %s463_s15 = sadd.s32 1, %s419_s12   ;;  %s25_s16 = sadd.s32 1, %s415_s11 }
   0x7   : > { %s22_s17 = ssub.s32 %s419_s12, %s463_s15  ;;  %p32_p0 = scmp.ne.s32.totalorder %s415_s11, %s411_s10 }
   0x8   : > { %p23_p1 = scmp.eq.s32.totalorder %s22_s17, 0  ;;  %p33_p2 = scmp.eq.s32.totalorder %s419_s12, 0 }
   0x9   : > { %p38_p3 = scmp.ne.s32.totalorder %s411_s10, %s407_s9  ;;  %p39_p4 = scmp.eq.s32.totalorder %s459_s13, 0 }
   0xa   : > { %s475_s18 = scalar_select %p23_p1, %s415_s11, %s25_s16  }
   0xb   : > { %p477_p5 = por %p33_p2, %p32_p0  ;;  %p481_p6 = por %p39_p4, %p38_p3 }
   0xc   : > { %p83_p7 = scmp.eq.s32.totalorder %s459_s13, 1  ;;  %p89_p8 = scmp.eq.s32.totalorder %s262_s14, 1 }
   0xd   : > { %p287_p10 = scmp.lt.s32.totalorder %s419_s12, 2  ;;  %s112_s23 = sand.u32 1, %s415_s11  }
   0xe   : > { %p488_p11 = por %p83_p7, %p32_p0  ;;  %p492_p12 = por %p89_p8, %p38_p3 }
   0xf   : > { %s266_s24 = sshll.u32 %s419_s12, 7  ;;  %s265_s25 = sshll.u32 %s112_s23, 3 }
  0x10   : > { %s610_s21 = scalar_select %p488_p11, 1, 0 }
  0x11   : > { %s611_s22 = scalar_select %p492_p12, 1, 0 }
  0x12   : > { %s501_s28 = scalar_lea.hbm %s604_s0, %s266_s24  ;;  %s116_s29 = scalar_lea.vmem [#allocation2], %s265_s25 }
  0x13   : > { %s123_s30 = sshll.u32 %s116_s29, 4  ;;  %p505_p13 = pnand %p287_p10, %p477_p5  ;;  %s509_s30 = int_to_ptr.vmem [resolvable:$true] %s123_s30 }
  0x14   : > { %s113_s4 = scalar_lea.sflag [#allocation3], %s112_s23  ;;  %s323_s5 = scalar_lea.hbm %s501_s28, 128 }
  0x15   : > { %p324_p2 = scmp.ne.s32.totalorder %s501_s28, %s323_s5  ;;  %p325_p3 = pneg %p505_p13 }
  0x16   : > { %s328_s8 = scalar_lea.hbm %s604_s0, 256  ;;  %p329_p5 = scmp.lt.u32.totalorder %s501_s28, %s604_s0 }
  0x17   : > { %p326_p4 = pnand %p325_p3, %p324_p2  ;;  %p330_p8 = scmp.lt.u32.totalorder %s328_s8, %s323_s5 }
  0x18   : > { %p332_p9 = scmp.lt.u32.totalorder %s323_s5, %s501_s28 }
  0x19   : > { %p327_p7 = pneg %p326_p4  ;;  %p331_p10 = por %p330_p8, %p329_p5 }
  0x1b   : > { %p333_p0 = por %p332_p9, %p331_p10 }
  0x1d   : > { %p334_p1 = pnand %p333_p0, %p327_p7 }
  0x1f   : > { %337 = shalt.err (!%p334_p1)
}
  0x20   : > { %s338_s17 = scalar_lea.vmem %s509_s30, 128  ;;  %s421_s19 = smov [#allocation2]  }
  0x21   : > { %p339_p2 = scmp.ne.s32.totalorder %s509_s30, %s338_s17  ;;  %s343_s23 = sshll.u32 %s421_s19, 4  ;;  %s344_s23 = int_to_ptr.vmem [resolvable:$false] %s343_s23 }
  0x22   : > { %s345_s24 = scalar_lea.vmem %s344_s23, 256  ;;  %p346_p11 = scmp.lt.s32.totalorder %s509_s30, %s344_s23 }
  0x23   : > { %p341_p4 = pnand %p339_p2, %p325_p3  ;;  %p347_p5 = scmp.lt.s32.totalorder %s345_s24, %s338_s17 }
  0x25   : > { %p342_p12 = pneg %p341_p4  ;;  %p348_p8 = por %p347_p5, %p346_p11 }
  0x27   : > { %p349_p9 = pnand %p348_p8, %p342_p12 }
  0x29   : > { %352 = shalt.err (!%p349_p9)
}
  0x2a   : > { %282 = dma.hbm_to_vmem [thread:$0]  (!%p505_p13), %s501_s28, 128, %s509_s30, %s113_s4  }
  0x2b   : > { %p613_p0 = scmp.lt.s32.totalorder %s419_s12, 3  ;;  %p614_p1 = scmp.ge.s32.totalorder %s419_s12, 1 }
  0x2d   : > { %p129_p3 = pnand %p614_p1, %p613_p0 }
  0x2e   : > { %s543_s25 = sand.u32 (!%p129_p3), 1, %s411_s10  }
  0x2f   : > { %132 = sbr.rel (%p129_p3) target bundleno = 232 (0xe8), region = 28  ;;  %s268_s26 = sshll.u32 (!%p129_p3), %s543_s25, 3 }
  0x30   : > { %s135_s27 = scalar_lea.sflag (!%p129_p3), [#allocation3], %s543_s25  ;;  %s138_s29 = scalar_lea.vmem (!%p129_p3), [#allocation2], %s268_s26 }
  0x36   : > { %398 = dma.done.wait (%p481_p6), %s135_s27, 128  }
  0x37   : > { %400 = vsyncadd (%p481_p6), %s135_s27, 4294967168  ;;  %v159_v0 = vld [vmem:[%s138_s29] sm:$0xff]  ;;  %vm161_vm0 = vcmask 261120   ;;  %s272_s20 = sshll.u32 %s459_s13, 7  ;;  %s158_s3 = scalar_lea.vmem [#allocation5], %s268_s26 }
  0x38   : > { %v160_v1 = vmul.f32 %v159_v0, %v159_v0  ;;  %v270_v6 = vld [vmem:[%s605_s1] ss:$0 sm:$0xff]  ;;  %s192_s4 = sshll.u32 %s158_s3, 4  ;;  %s559_s7 = scalar_lea.hbm %s606_s2, %s272_s20  ;;  %s561_s4 = int_to_ptr.vmem [resolvable:$true] %s192_s4 }
  0x39   : > { %v175_v7 = vmul.f32 %v270_v6, %v159_v0  ;;  %s179_s8 = scalar_lea.sflag [#allocation4], %s543_s25  ;;  %s353_s14 = scalar_lea.vmem %s561_s4, 128 }
  0x3a   : > { %v162_v2 = vsel %vm161_vm0, %v160_v1, 0.0  ;;  %p354_p6 = scmp.ne.s32.totalorder %s561_s4, %s353_s14  ;;  %p615_p11 = scmp.ne.s32.totalorder %s610_s21, 0 }
  0x3b   : > { %163 = vadd.xlane.f32.xlu0 %v162_v2  ;;  %s422_s13 = smov [#allocation5]  }
  0x3c   : > { %p355_p12 = pnand %p354_p6, %p615_p11  ;;  %s357_s16 = sshll.u32 %s422_s13, 4  ;;  %s358_s16 = int_to_ptr.vmem [resolvable:$false] %s357_s16 }
  0x3d   : > { %s359_s17 = scalar_lea.vmem %s358_s16, 256  ;;  %p360_p7 = scmp.lt.s32.totalorder %s561_s4, %s358_s16 }
  0x3e   : > { %p356_p13 = pneg %p355_p12  ;;  %p361_p10 = scmp.lt.s32.totalorder %s359_s17, %s353_s14 }
  0x40   : > { %p362_p2 = por %p361_p10, %p360_p7 }
  0x42   : > { %p363_p4 = pnand %p362_p2, %p356_p13 }
  0xc8   : > { %v164_v3 = vpop.xlane.xlu0 %163 }
  0xc9   : > { %v165_v4 = vmul.f32 0.03125, %v164_v3 }
  0xcb   : > { %v166_v5 = vadd.f32 1e-06, %v165_v4 }
  0xcd   : > { %321 = vrsqrt.f32 %v166_v5 }
  0xd7   : > { %v322_v8 = vpop.eup %321 }
  0xd8   : > { %v176_v9 = vmul.f32 %v322_v8, %v175_v7 }
  0xda   : > { %177 = vst.msk [vmem:[%s158_s3] sm:$0xff] %vm161_vm0, %v176_v9 }
  0xdb   : > { %366 = shalt.err (!%p363_p4)
}
  0xdc   : > { %s367_s19 = scalar_lea.hbm %s559_s7, 128  ;;  %s371_s25 = scalar_lea.hbm %s606_s2, 256 }
  0xdd   : > { %p368_p5 = scmp.ne.s32.totalorder %s559_s7, %s367_s19  ;;  %p372_p0 = scmp.lt.u32.totalorder %s559_s7, %s606_s2 }
  0xde   : > { %p373_p1 = scmp.lt.u32.totalorder %s371_s25, %s367_s19  ;;  %p375_p6 = scmp.lt.u32.totalorder %s367_s19, %s559_s7 }
  0xdf   : > { %p369_p8 = pnand %p368_p5, %p615_p11 }
  0xe0   : > { %p374_p3 = por %p373_p1, %p372_p0 }
  0xe1   : > { %p370_p9 = pneg %p369_p8 }
  0xe2   : > { %p376_p12 = por %p375_p6, %p374_p3 }
  0xe4   : > { %p377_p13 = pnand %p376_p12, %p370_p9 }
  0xe6   : > { %380 = shalt.err (!%p377_p13)
}
  0xe7   : > { %277 = dma.vmem_to_hbm [thread:$0]  (%p615_p11), %s561_s4, 128, %s559_s7, %s179_s8  }
  0xe8 PF: > { %s204_s29 = sand.u32 1, %s407_s9   ;;  %p616_p7 = scmp.ne.s32.totalorder %s611_s22, 0 }
  0xe9   : > { %p617_p10 = scmp.ge.s32.totalorder %s419_s12, 2  ;;  %s205_s28 = scalar_lea.sflag [#allocation4], %s204_s29 }
  0xeb   : > { %p284_p2 = pnand %p617_p10, %p616_p7 }
  0xed   : > { %402 = dma.done.wait (!%p284_p2), %s205_s28, 128  }
  0xee   : > { %404 = vsyncadd (!%p284_p2), %s205_s28, 4294967168  ;;  %p15_p4 = scmp.ge.s32.totalorder %s463_s15, 4   ;;  %s618_s9 = smov %s411_s10 }
  0xef   : > { %s619_s10 = smov %s415_s11  ;;  %s620_s11 = smov %s475_s18 }
  0xf0   : > { %s621_s12 = smov %s463_s15  ;;  %17 = sbr.rel (!%p15_p4) target bundleno = 5 (0x5), region = 73 }
  0xf7   :  { %210 = vsyncpa [#allocation3], 1 }
  0xf8   :  { %212 = vsyncpa [#allocation3 + $0x1], 1 }
  0xf9   :  { %213 = vsyncpa [#allocation4], 1 }
  0xfa   :  { %215 = vsyncpa [#allocation4 + $0x1], 1 }

</bundles_post_ra>
